<compile_context>
chip_gen: v7x
topology: tpu7x:2x2x1
jax: 0.10.0
libtpu: 0.0.40
codegen_flags: <defaults>
</compile_context>

<pallas_src>
import functools
import math

import jax
import jax.numpy as jnp
from jax.experimental import pallas as pl
from jax.experimental.pallas import tpu as pltpu


def _round_up(x, m):
    return ((x + m - 1) // m) * m


# --------------------------------------------------------------------------------------
# VMEM configuration & tile-size selection (accounts for (8,128) physical tile padding).
# --------------------------------------------------------------------------------------
def _vmem_config():
    """Returns (vmem_limit_bytes, resident_block_budget_bytes), generation dependent."""
    phys = 64 * 1024 * 1024                     # conservative default (v7x: 64 MiB / TC)
    try:
        info = pltpu.get_tpu_info()
        cap = getattr(info, "vmem_capacity_bytes", None)
        if cap:
            phys = int(cap)
    except Exception:
        pass
    limit = max(32 * 1024 * 1024, min((phys * 3) // 4, 100 * 1024 * 1024))
    budget = (limit * 2) // 3                   # headroom for compiler temporaries
    return limit, budget


def _choose_bt(b, footprint_fn, budget_bytes):
    """Largest divisor of b whose padded VMEM footprint fits; prefer >=2 and even #steps."""
    fitting = [x for x in range(1, b + 1) if b % x == 0 and footprint_fn(x) <= budget_bytes]
    if not fitting:
        fitting = [1]
    if b >= 2:                                  # >=2 grid steps so both v7x TCs get work
        multi = [x for x in fitting if x < b]
        if multi:
            fitting = multi
    even = [x for x in fitting if (b // x) % 2 == 0]   # balanced 2-TC sharding
    return max(even) if even else max(fitting)


def _fused_footprint(bt, q_len, kv_len, d, itemsize):
    """Padded VMEM bytes for the fused (Path A) kernel at batch tile bt."""
    d_l = _round_up(d, 128)
    kv_l = _round_up(kv_len, 128)
    kv_s = _round_up(kv_len, 8)
    bt_s = _round_up(bt, 8)
    if q_len == 1:
        q_b = bt_s * d_l * itemsize                       # squeezed (bt, d) block
    else:
        q_b = bt * _round_up(q_len, 8) * d_l * itemsize
    k_b = bt * kv_s * d_l * itemsize
    out_b = bt_s * d_l * itemsize
    sc_b = bt_s * kv_l * 4
    blocks = 2 * (q_b + 2 * k_b + out_b + sc_b)           # double-buffered pipeline blocks
    temps = 4 * bt_s * d_l * 4                            # f32 temporaries inside kernel
    return blocks + temps


def _scores_footprint(bt, q_len, kv_len, td, itemsize):
    kv_l = _round_up(kv_len, 128)
    kv_s = _round_up(kv_len, 8)
    bt_s = _round_up(bt, 8)
    if q_len == 1:
        q_b = bt_s * td * itemsize
        acc_b = bt_s * kv_l * 4
    else:
        q_b = bt * _round_up(q_len, 8) * td * itemsize
        acc_b = bt * _round_up(q_len, 8) * kv_l * 4
    k_b = bt * kv_s * td * itemsize
    sc_b = bt_s * kv_l * 4
    return 2 * (q_b + k_b + sc_b) + acc_b + 4 * bt_s * td * 4


def _pv_footprint(bt, kv_len, td, itemsize):
    kv_l = _round_up(kv_len, 128)
    kv_s = _round_up(kv_len, 8)
    bt_s = _round_up(bt, 8)
    return 2 * (bt * kv_s * td * itemsize + bt_s * kv_l * 4 + bt_s * td * itemsize) \
        + 4 * bt_s * td * 4


# --------------------------------------------------------------------------------------
# In-kernel helpers (all f32 accumulation; exact softmax for parity with PyTorch).
# --------------------------------------------------------------------------------------
def _softmax_last(s):
    s = s - jnp.max(s, axis=-1, keepdims=True)
    e = jnp.exp(s)
    return e / jnp.sum(e, axis=-1, keepdims=True)


def _qk_vpu(q, k_ref, kv_len):
    """q: (bt, td) f32; k_ref block (bt, kv_len, td) -> (bt, kv_len) f32 partial scores.
    kv_len is tiny, so QK^T is a VPU multiply + lane reduce (MXU would waste >95%/push)."""
    cols = []
    for kk in range(kv_len):
        k_kk = k_ref[:, kk, :].astype(jnp.float32)
        cols.append(jnp.sum(q * k_kk, axis=-1, keepdims=True))
    return jnp.concatenate(cols, axis=-1)


def _pv_vpu(p, v_ref, kv_len):
    """p: (bt, kv_len) f32; v_ref block (bt, kv_len, td) -> (bt, td) f32 weighted sum.
    Unrolled VPU MACs instead of an 8-deep MXU contraction."""
    acc = p[:, 0:1] * v_ref[:, 0, :].astype(jnp.float32)
    for kk in range(1, kv_len):
        acc = acc + p[:, kk:kk + 1] * v_ref[:, kk, :].astype(jnp.float32)
    return acc


# --------------------------------------------------------------------------------------
# Path A: full-D fused kernel, bt batches per grid step.
# --------------------------------------------------------------------------------------
def _fused_kernel(q_ref, k_ref, v_ref, out_ref, score_ref, *, inv_dk, q_len, kv_len):
    if q_len == 1:
        q = q_ref[0].astype(jnp.float32)                         # (bt, d)
        s = _qk_vpu(q, k_ref, kv_len) * inv_dk                   # (bt, kv_len)
    else:
        s = jnp.einsum('bqd,bkd->bqk', q_ref[...], k_ref[...],
                       preferred_element_type=jnp.float32) * inv_dk
        s = jnp.sqrt(jnp.sum(s * s, axis=1))                     # norm over q_len
    p = _softmax_last(s)                                         # (bt, kv_len) f32
    score_ref[...] = p[None]
    out_ref[...] = _pv_vpu(p, v_ref, kv_len)[None].astype(out_ref.dtype)


# --------------------------------------------------------------------------------------
# Path B: D-chunked fallback (very large D / small VMEM) -- two pallas_calls so no VMEM
# is wasted on parked double-buffers: (1) streamed QK^T + softmax, (2) streamed PV.
# --------------------------------------------------------------------------------------
def _scores_kernel(q_ref, k_ref, score_ref, s_acc, *, inv_dk, q_len, kv_len):
    di = pl.program_id(1)
    nd = pl.num_programs(1)

    @pl.when(di == 0)
    def _():
        s_acc[...] = jnp.zeros_like(s_acc)

    if q_len == 1:
        q = q_ref[0].astype(jnp.float32)                         # (bt, td)
        s_acc[...] += _qk_vpu(q, k_ref, kv_len)
    else:
        s_acc[...] += jnp.einsum('bqd,bkd->bqk', q_ref[...], k_ref[...],
                                 preferred_element_type=jnp.float32)

    @pl.when(di == nd - 1)
    def _():
        s = s_acc[...] * inv_dk
        if q_len != 1:
            s = jnp.sqrt(jnp.sum(s * s, axis=1))
        score_ref[...] = _softmax_last(s)[None]


def _pv_kernel(score_ref, v_ref, out_ref, *, kv_len):
    p = score_ref[0]                                             # (bt, kv_len) f32
    out_ref[...] = _pv_vpu(p, v_ref, kv_len)[None].astype(out_ref.dtype)


# --------------------------------------------------------------------------------------
# Wrapper
# --------------------------------------------------------------------------------------
def temporal_attention(q, k, v, *, d_chunk=1024, force_d_tiled=False, compute_dtype=None):
    """q: (B, q_len, C, H, W); k, v: (B, kv_len, C, H, W). Returns (weighted, score).
    compute_dtype=jnp.bfloat16 halves HBM traffic; accumulation stays in f32."""
    b, q_len, c, h, w = q.shape
    kv_len = k.shape[1]
    d = c * h * w
    if compute_dtype is not None:
        q, k, v = (x.astype(compute_dtype) for x in (q, k, v))
    dtype = q.dtype
    itemsize = jnp.dtype(dtype).itemsize
    inv_dk = 1.0 / math.sqrt(float(d))

    vmem_limit, vmem_budget = _vmem_config()

    q_flat = q.reshape(b, d) if q_len == 1 else q.reshape(b, q_len, d)
    k_flat = k.reshape(b, kv_len, d)
    v_flat = v.reshape(b, kv_len, d)

    cost = pl.CostEstimate(
        flops=int(2 * b * q_len * kv_len * d + 2 * b * kv_len * d),
        transcendentals=int(b * kv_len),
        bytes_accessed=int(b * (q_len + 2 * kv_len + 1) * d * itemsize + b * kv_len * 4),
    )

    use_d_tiled = force_d_tiled or (
        _fused_footprint(1, q_len, kv_len, d, itemsize) > vmem_budget)

    # ----------------------------- Path A: full-D fused -----------------------------
    if not use_d_tiled:
        bt = _choose_bt(b, lambda x: _fused_footprint(x, q_len, kv_len, d, itemsize),
                        vmem_budget)
        nbt = b // bt

        if q_len == 1:
            q_in = q_flat.reshape(nbt, bt, d)                     # free contiguous reshape
            q_spec = pl.BlockSpec((1, bt, d), lambda i: (i, 0, 0))
        else:
            q_in = q_flat
            q_spec = pl.BlockSpec((bt, q_len, d), lambda i: (i, 0, 0))

        out, score = pl.pallas_call(
            functools.partial(_fused_kernel, inv_dk=inv_dk, q_len=q_len, kv_len=kv_len),
            out_shape=(
                jax.ShapeDtypeStruct((nbt, bt, d), dtype),
                jax.ShapeDtypeStruct((nbt, bt, kv_len), jnp.float32),
            ),
            grid_spec=pltpu.PrefetchScalarGridSpec(
                num_scalar_prefetch=0,
                grid=(nbt,),
                in_specs=[
                    q_spec,
                    pl.BlockSpec((bt, kv_len, d), lambda i: (i, 0, 0)),
                    pl.BlockSpec((bt, kv_len, d), lambda i: (i, 0, 0)),
                ],
                out_specs=[
                    pl.BlockSpec((1, bt, d), lambda i: (i, 0, 0)),
                    pl.BlockSpec((1, bt, kv_len), lambda i: (i, 0, 0)),
                ],
            ),
            compiler_params=pltpu.CompilerParams(
                dimension_semantics=("parallel",),
                vmem_limit_bytes=vmem_limit,
            ),
            cost_estimate=cost,
        )(q_in, k_flat, v_flat)

        weighted = out.reshape(b, 1, c, h, w)
        return weighted, score.reshape(b, 1, kv_len)

    # ----------------------- Path B: D-chunked two-call fallback -----------------------
    cap = max(128, _round_up(min(d, d_chunk), 128))
    td = None
    for cand in range(cap, 0, -128):                              # lane-aligned divisor of D
        if d % cand == 0:
            td = cand
            break
    if td is None:
        td = cap
    d_pad = _round_up(d, td)
    nd = d_pad // td

    if d_pad != d:
        # TODO(synk): last-resort zero-pad of D (extra HBM pass); only hit when D has no
        # 128-multiple divisor <= d_chunk.
        pad_last = [(0, 0)] * (q_flat.ndim - 1) + [(0, d_pad - d)]
        q_flat = jnp.pad(q_flat, pad_last)
        k_flat = jnp.pad(k_flat, [(0, 0), (0, 0), (0, d_pad - d)])
        v_flat = jnp.pad(v_flat, [(0, 0), (0, 0), (0, d_pad - d)])

    bt = _choose_bt(
        b,
        lambda x: max(_scores_footprint(x, q_len, kv_len, td, itemsize),
                      _pv_footprint(x, kv_len, td, itemsize)),
        vmem_budget)
    nbt = b // bt

    if q_len == 1:
        q_in = q_flat.reshape(nbt, bt, d_pad)
        q_spec = pl.BlockSpec((1, bt, td), lambda i, di: (i, 0, di))
        acc_shape = pltpu.VMEM((bt, kv_len), jnp.float32)
    else:
        q_in = q_flat
        q_spec = pl.BlockSpec((bt, q_len, td), lambda i, di: (i, 0, di))
        acc_shape = pltpu.VMEM((bt, q_len, kv_len), jnp.float32)

    score = pl.pallas_call(
        functools.partial(_scores_kernel, inv_dk=inv_dk, q_len=q_len, kv_len=kv_len),
        out_shape=jax.ShapeDtypeStruct((nbt, bt, kv_len), jnp.float32),
        grid_spec=pltpu.PrefetchScalarGridSpec(
            num_scalar_prefetch=0,
            grid=(nbt, nd),
            in_specs=[
                q_spec,
                pl.BlockSpec((bt, kv_len, td), lambda i, di: (i, 0, di)),
            ],
            out_specs=pl.BlockSpec((1, bt, kv_len), lambda i, di: (i, 0, 0)),
            scratch_shapes=[acc_shape],
        ),
        compiler_params=pltpu.CompilerParams(
            dimension_semantics=("parallel", "arbitrary"),
            vmem_limit_bytes=vmem_limit,
        ),
        cost_estimate=cost,
    )(q_in, k_flat)

    out = pl.pallas_call(
        functools.partial(_pv_kernel, kv_len=kv_len),
        out_shape=jax.ShapeDtypeStruct((nbt, bt, d_pad), dtype),
        grid_spec=pltpu.PrefetchScalarGridSpec(
            num_scalar_prefetch=0,
            grid=(nbt, nd),
            in_specs=[
                pl.BlockSpec((1, bt, kv_len), lambda i, di: (i, 0, 0)),
                pl.BlockSpec((bt, kv_len, td), lambda i, di: (i, 0, di)),
            ],
            out_specs=pl.BlockSpec((1, bt, td), lambda i, di: (i, 0, di)),
        ),
        compiler_params=pltpu.CompilerParams(
            dimension_semantics=("parallel", "parallel"),
            vmem_limit_bytes=vmem_limit,
        ),
        cost_estimate=cost,
    )(score, v_flat)

    weighted = out.reshape(b, d_pad)[:, :d].reshape(b, 1, c, h, w)
    return weighted, score.reshape(b, 1, kv_len)


# --------------------------------------------------------------------------------------
# Pure-JAX reference mirroring the PyTorch forward exactly.
# --------------------------------------------------------------------------------------
def _reference(q, k, v):
    b, q_len, c, h, w = q.shape
    kv_len = k.shape[1]
    d = c * h * w
    wq = q.reshape(b, q_len, d)
    wk = jnp.transpose(k.reshape(b, kv_len, d), (0, 2, 1))
    wv = v.reshape(b, kv_len, d)
    sim = jnp.matmul(wq, wk) / jnp.sqrt(jnp.float32(d))
    if q_len != 1:
        sim = jnp.linalg.norm(sim, axis=1, keepdims=True)
    score = jax.nn.softmax(sim, axis=-1)
    out = jnp.matmul(score, wv).reshape(b, 1, c, h, w)
    return out, score


if __name__ == "__main__":
    key = jax.random.PRNGKey(0)

    def _check(qx, kx, vx, **kwargs):
        wt, sc = temporal_attention(qx, kx, vx, **kwargs)
        jax.block_until_ready((wt, sc))
        rw, rs = _reference(qx, kx, vx)
        assert wt.shape == rw.shape and sc.shape == rs.shape, (wt.shape, sc.shape)
        assert jnp.allclose(wt, rw, atol=1e-4, rtol=1e-4), float(jnp.max(jnp.abs(wt - rw)))
        assert jnp.allclose(sc, rs, atol=1e-4, rtol=1e-4), float(jnp.max(jnp.abs(sc - rs)))

    # Test 1: Path A, q_len > 1 (norm branch), B=6 -> bt=3, 2 balanced grid steps.
    k1, k2, k3, key = jax.random.split(key, 4)
    q = jax.random.normal(k1, (6, 4, 4, 4, 8), dtype=jnp.float32)   # D = 128
    k = jax.random.normal(k2, (6, 8, 4, 4, 8), dtype=jnp.float32)
    v = jax.random.normal(k3, (6, 8, 4, 4, 8), dtype=jnp.float32)
    _check(q, k, v)

    # Test 2: Path A, q_len == 1 (squeezed dense layout), prime B.
    k1, k2, k3, key = jax.random.split(key, 4)
    q = jax.random.normal(k1, (5, 1, 2, 8, 8), dtype=jnp.float32)   # D = 128
    k = jax.random.normal(k2, (5, 7, 2, 8, 8), dtype=jnp.float32)
    v = jax.random.normal(k3, (5, 7, 2, 8, 8), dtype=jnp.float32)
    _check(q, k, v)

    # Test 3: Path B forced, q_len == 1, D = 256 split into two 128-lane chunks (no pad).
    k1, k2, k3, key = jax.random.split(key, 4)
    q = jax.random.normal(k1, (4, 1, 2, 8, 16), dtype=jnp.float32)  # D = 256
    k = jax.random.normal(k2, (4, 5, 2, 8, 16), dtype=jnp.float32)
    v = jax.random.normal(k3, (4, 5, 2, 8, 16), dtype=jnp.float32)
    _check(q, k, v, force_d_tiled=True, d_chunk=128)

    # Test 4: Path B forced, q_len > 1, D = 192 (no 128-multiple divisor -> padded tail).
    k1, k2, k3, key = jax.random.split(key, 4)
    q = jax.random.normal(k1, (3, 3, 3, 8, 8), dtype=jnp.float32)   # D = 192
    k = jax.random.normal(k2, (3, 4, 3, 8, 8), dtype=jnp.float32)
    v = jax.random.normal(k3, (3, 4, 3, 8, 8), dtype=jnp.float32)
    _check(q, k, v, force_d_tiled=True, d_chunk=128)

    print("KERNEL_OK")
</pallas_src>

<mosaic_0001>
module attributes {stable_mosaic.version = 11 : i64} {
  func.func @_fused_kernel(%arg0: i32, %arg1: memref<3x4x128xf32, #tpu.memory_space<vmem>>, %arg2: memref<3x8x128xf32, #tpu.memory_space<vmem>>, %arg3: memref<3x8x128xf32, #tpu.memory_space<vmem>>, %arg4: memref<1x3x128xf32, #tpu.memory_space<vmem>>, %arg5: memref<1x3x8xf32, #tpu.memory_space<vmem>>) attributes {dimension_semantics = [#tpu.dimension_semantics<parallel>], iteration_bounds = array<i64: 2>, scalar_prefetch = 0 : i64, scratch_operands = 0 : i64, tpu.core_type = #tpu.core_type<tc>, window_params = [{transform_indices = @transform_0, window_bounds = array<i64: 3, 4, 128>}, {transform_indices = @transform_1, window_bounds = array<i64: 3, 8, 128>}, {transform_indices = @transform_2, window_bounds = array<i64: 3, 8, 128>}, {transform_indices = @transform_3, window_bounds = array<i64: 1, 3, 128>}, {transform_indices = @transform_4, window_bounds = array<i64: 1, 3, 8>}]} {
    %c0 = arith.constant 0 : index
    %c0_0 = arith.constant 0 : index
    %c0_1 = arith.constant 0 : index
    %0 = vector.load %arg1[%c0, %c0_0, %c0_1] : memref<3x4x128xf32, #tpu.memory_space<vmem>>, vector<3x4x128xf32>
    %c0_2 = arith.constant 0 : index
    %c0_3 = arith.constant 0 : index
    %c0_4 = arith.constant 0 : index
    %1 = vector.load %arg2[%c0_2, %c0_3, %c0_4] : memref<3x8x128xf32, #tpu.memory_space<vmem>>, vector<3x8x128xf32>
    "tpu.trace_start"() <{level = 10 : i32, message = "bqd,bkd->bqk"}> : () -> ()
    %cst = arith.constant dense<0.000000e+00> : vector<3x4x8xf32>
    %2 = tpu.matmul %0, %1, %cst {dimension_numbers = #tpu.dot_dimension_numbers<[2], [2], [1], [1], [0, 0, 0, 1, 1, 1], [0], [0]>} : vector<3x4x128xf32>, vector<3x8x128xf32>, vector<3x4x8xf32> -> vector<3x4x8xf32>
    "tpu.trace_stop"() : () -> ()
    %cst_5 = arith.constant 0.0883883461 : f32
    %3 = vector.broadcast %cst_5 : f32 to vector<3x4x8xf32>
    %4 = arith.mulf %2, %3 : vector<3x4x8xf32>
    %5 = arith.mulf %4, %4 : vector<3x4x8xf32>
    %cst_6 = arith.constant dense<0.000000e+00> : vector<3x8xf32>
    %6 = vector.multi_reduction <add>, %5, %cst_6 [1] : vector<3x4x8xf32> to vector<3x8xf32>
    %7 = math.sqrt %6 : vector<3x8xf32>
    %cst_7 = arith.constant dense<0xFF800000> : vector<3xf32>
    %8 = vector.multi_reduction <maximumf>, %7, %cst_7 [1] : vector<3x8xf32> to vector<3xf32>
    %9 = vector.shape_cast %8 : vector<3xf32> to vector<3x1xf32>
    %10 = vector.broadcast %9 : vector<3x1xf32> to vector<3x8xf32>
    %11 = arith.subf %7, %10 : vector<3x8xf32>
    %12 = math.exp %11 : vector<3x8xf32>
    %cst_8 = arith.constant dense<0.000000e+00> : vector<3xf32>
    %13 = vector.multi_reduction <add>, %12, %cst_8 [1] : vector<3x8xf32> to vector<3xf32>
    %14 = vector.shape_cast %13 : vector<3xf32> to vector<3x1xf32>
    %15 = vector.broadcast %14 : vector<3x1xf32> to vector<3x8xf32>
    %16 = arith.divf %12, %15 : vector<3x8xf32>
    %17 = vector.shape_cast %16 : vector<3x8xf32> to vector<1x3x8xf32>
    %c0_9 = arith.constant 0 : index
    %c0_10 = arith.constant 0 : index
    %c0_11 = arith.constant 0 : index
    %18 = vector.load %arg5[%c0_9, %c0_10, %c0_11] : memref<1x3x8xf32, #tpu.memory_space<vmem>>, vector<1x3x8xf32>
    tpu.vector_store %arg5[%c0_9, %c0_10, %c0_11], %17 {strides = array<i32>} : memref<1x3x8xf32, #tpu.memory_space<vmem>>, vector<1x3x8xf32>,
    %19 = vector.extract_strided_slice %16 {offsets = [0, 0], sizes = [3, 1], strides = [1, 1]} : vector<3x8xf32> to vector<3x1xf32>
    %c0_12 = arith.constant 0 : index
    %c0_13 = arith.constant 0 : index
    %c0_14 = arith.constant 0 : index
    %20 = vector.load %arg3[%c0_12, %c0_13, %c0_14] : memref<3x8x128xf32, #tpu.memory_space<vmem>>, vector<3x1x128xf32>
    %21 = vector.shape_cast %20 : vector<3x1x128xf32> to vector<3x128xf32>
    %22 = vector.broadcast %19 : vector<3x1xf32> to vector<3x128xf32>
    %23 = arith.mulf %22, %21 : vector<3x128xf32>
    %24 = vector.extract_strided_slice %16 {offsets = [0, 1], sizes = [3, 1], strides = [1, 1]} : vector<3x8xf32> to vector<3x1xf32>
    %c0_15 = arith.constant 0 : index
    %c1 = arith.constant 1 : index
    %c0_16 = arith.constant 0 : index
    %25 = vector.load %arg3[%c0_15, %c1, %c0_16] : memref<3x8x128xf32, #tpu.memory_space<vmem>>, vector<3x1x128xf32>
    %26 = vector.shape_cast %25 : vector<3x1x128xf32> to vector<3x128xf32>
    %27 = vector.broadcast %24 : vector<3x1xf32> to vector<3x128xf32>
    %28 = arith.mulf %27, %26 : vector<3x128xf32>
    %29 = arith.addf %23, %28 : vector<3x128xf32>
    %30 = vector.extract_strided_slice %16 {offsets = [0, 2], sizes = [3, 1], strides = [1, 1]} : vector<3x8xf32> to vector<3x1xf32>
    %c0_17 = arith.constant 0 : index
    %c2 = arith.constant 2 : index
    %c0_18 = arith.constant 0 : index
    %31 = vector.load %arg3[%c0_17, %c2, %c0_18] : memref<3x8x128xf32, #tpu.memory_space<vmem>>, vector<3x1x128xf32>
    %32 = vector.shape_cast %31 : vector<3x1x128xf32> to vector<3x128xf32>
    %33 = vector.broadcast %30 : vector<3x1xf32> to vector<3x128xf32>
    %34 = arith.mulf %33, %32 : vector<3x128xf32>
    %35 = arith.addf %29, %34 : vector<3x128xf32>
    %36 = vector.extract_strided_slice %16 {offsets = [0, 3], sizes = [3, 1], strides = [1, 1]} : vector<3x8xf32> to vector<3x1xf32>
    %c0_19 = arith.constant 0 : index
    %c3 = arith.constant 3 : index
    %c0_20 = arith.constant 0 : index
    %37 = vector.load %arg3[%c0_19, %c3, %c0_20] : memref<3x8x128xf32, #tpu.memory_space<vmem>>, vector<3x1x128xf32>
    %38 = vector.shape_cast %37 : vector<3x1x128xf32> to vector<3x128xf32>
    %39 = vector.broadcast %36 : vector<3x1xf32> to vector<3x128xf32>
    %40 = arith.mulf %39, %38 : vector<3x128xf32>
    %41 = arith.addf %35, %40 : vector<3x128xf32>
    %42 = vector.extract_strided_slice %16 {offsets = [0, 4], sizes = [3, 1], strides = [1, 1]} : vector<3x8xf32> to vector<3x1xf32>
    %c0_21 = arith.constant 0 : index
    %c4 = arith.constant 4 : index
    %c0_22 = arith.constant 0 : index
    %43 = vector.load %arg3[%c0_21, %c4, %c0_22] : memref<3x8x128xf32, #tpu.memory_space<vmem>>, vector<3x1x128xf32>
    %44 = vector.shape_cast %43 : vector<3x1x128xf32> to vector<3x128xf32>
    %45 = vector.broadcast %42 : vector<3x1xf32> to vector<3x128xf32>
    %46 = arith.mulf %45, %44 : vector<3x128xf32>
    %47 = arith.addf %41, %46 : vector<3x128xf32>
    %48 = vector.extract_strided_slice %16 {offsets = [0, 5], sizes = [3, 1], strides = [1, 1]} : vector<3x8xf32> to vector<3x1xf32>
    %c0_23 = arith.constant 0 : index
    %c5 = arith.constant 5 : index
    %c0_24 = arith.constant 0 : index
    %49 = vector.load %arg3[%c0_23, %c5, %c0_24] : memref<3x8x128xf32, #tpu.memory_space<vmem>>, vector<3x1x128xf32>
    %50 = vector.shape_cast %49 : vector<3x1x128xf32> to vector<3x128xf32>
    %51 = vector.broadcast %48 : vector<3x1xf32> to vector<3x128xf32>
    %52 = arith.mulf %51, %50 : vector<3x128xf32>
    %53 = arith.addf %47, %52 : vector<3x128xf32>
    %54 = vector.extract_strided_slice %16 {offsets = [0, 6], sizes = [3, 1], strides = [1, 1]} : vector<3x8xf32> to vector<3x1xf32>
    %c0_25 = arith.constant 0 : index
    %c6 = arith.constant 6 : index
    %c0_26 = arith.constant 0 : index
    %55 = vector.load %arg3[%c0_25, %c6, %c0_26] : memref<3x8x128xf32, #tpu.memory_space<vmem>>, vector<3x1x128xf32>
    %56 = vector.shape_cast %55 : vector<3x1x128xf32> to vector<3x128xf32>
    %57 = vector.broadcast %54 : vector<3x1xf32> to vector<3x128xf32>
    %58 = arith.mulf %57, %56 : vector<3x128xf32>
    %59 = arith.addf %53, %58 : vector<3x128xf32>
    %60 = vector.extract_strided_slice %16 {offsets = [0, 7], sizes = [3, 1], strides = [1, 1]} : vector<3x8xf32> to vector<3x1xf32>
    %c0_27 = arith.constant 0 : index
    %c7 = arith.constant 7 : index
    %c0_28 = arith.constant 0 : index
    %61 = vector.load %arg3[%c0_27, %c7, %c0_28] : memref<3x8x128xf32, #tpu.memory_space<vmem>>, vector<3x1x128xf32>
    %62 = vector.shape_cast %61 : vector<3x1x128xf32> to vector<3x128xf32>
    %63 = vector.broadcast %60 : vector<3x1xf32> to vector<3x128xf32>
    %64 = arith.mulf %63, %62 : vector<3x128xf32>
    %65 = arith.addf %59, %64 : vector<3x128xf32>
    %66 = vector.shape_cast %65 : vector<3x128xf32> to vector<1x3x128xf32>
    %c0_29 = arith.constant 0 : index
    %c0_30 = arith.constant 0 : index
    %c0_31 = arith.constant 0 : index
    %67 = vector.load %arg4[%c0_29, %c0_30, %c0_31] : memref<1x3x128xf32, #tpu.memory_space<vmem>>, vector<1x3x128xf32>
    tpu.vector_store %arg4[%c0_29, %c0_30, %c0_31], %66 {strides = array<i32>} : memref<1x3x128xf32, #tpu.memory_space<vmem>>, vector<1x3x128xf32>,
    return
  }
  func.func @transform_0(%arg0: i32) -> (i32, i32, i32) {
    %c0_i32 = arith.constant 0 : i32
    %c0_i32_0 = arith.constant 0 : i32
    %c0_i32_1 = arith.constant 0 : i32
    return %arg0, %c0_i32, %c0_i32_0 : i32, i32, i32
  }
  func.func @transform_1(%arg0: i32) -> (i32, i32, i32) {
    %c0_i32 = arith.constant 0 : i32
    %c0_i32_0 = arith.constant 0 : i32
    %c0_i32_1 = arith.constant 0 : i32
    return %arg0, %c0_i32, %c0_i32_0 : i32, i32, i32
  }
  func.func @transform_2(%arg0: i32) -> (i32, i32, i32) {
    %c0_i32 = arith.constant 0 : i32
    %c0_i32_0 = arith.constant 0 : i32
    %c0_i32_1 = arith.constant 0 : i32
    return %arg0, %c0_i32, %c0_i32_0 : i32, i32, i32
  }
  func.func @transform_3(%arg0: i32) -> (i32, i32, i32) {
    %c0_i32 = arith.constant 0 : i32
    %c0_i32_0 = arith.constant 0 : i32
    %c0_i32_1 = arith.constant 0 : i32
    return %arg0, %c0_i32, %c0_i32_0 : i32, i32, i32
  }
  func.func @transform_4(%arg0: i32) -> (i32, i32, i32) {
    %c0_i32 = arith.constant 0 : i32
    %c0_i32_0 = arith.constant 0 : i32
    %c0_i32_1 = arith.constant 0 : i32
    return %arg0, %c0_i32, %c0_i32_0 : i32, i32, i32
  }
}

</mosaic_0001>

<bundles_post_ra>
// kernel: tpu_custom_call.1
= control target key start
LH: loop header
LB: loop body
LE: loop exit
PB: predicated region body
PF: predicated region fallthrough
CT: control target
= control target key end

     0   :  { %10 = vsyncpa [#allocation3], 0  ;;  %s1509_s0 = inlined_call_operand.hbm [shape: f32[6,4,128], index: 0, kind: input, shape index: {}]   ;;  %s1510_s1 = inlined_call_operand.hbm [shape: f32[6,8,128], index: 1, kind: input, shape index: {}]   ;;  %s1511_s2 = inlined_call_operand.hbm [shape: f32[6,8,128], index: 2, kind: input, shape index: {}]   ;;  %s1512_s3 = inlined_call_operand.vmem [shape: f32[2,3,128], index: 3, kind: output, shape index: {0}]   ;;  %s1513_s4 = inlined_call_operand.vmem [shape: f32[2,3,8], index: 4, kind: output, shape index: {1}]  }
   0x1   :  { %12 = vsyncpa [#allocation3 + $0x1], 0 }
   0x2   :  { %13 = vsyncpa [#allocation5], 0 }
   0x3   :  { %15 = vsyncpa [#allocation5 + $0x1], 0  ;;  %s1254_s15 = smov 0   ;;  %s1256_s16 = smov 0  }
   0x4   :  { %s1258_s17 = smov 0   ;;  %s1260_s18 = smov 0  }
   0x5 LB: > { %s1273_s19 = sadd.s32 4294967295, %s1210_s18   ;;  %s1276_s20 = sadd.s32 1, %s1210_s18   ;;  %s1210_s18 = sphi %s1260_s18, %s1526_s18   ;;  %s1206_s17 = sphi %s1258_s17, %s1525_s17   ;;  %s1202_s16 = sphi %s1256_s16, %s1524_s16   ;;  %s1198_s15 = sphi %s1254_s15, %s1523_s15  }
   0x6   : > { %s25_s21 = ssub.s32 %s1210_s18, %s1276_s20  ;;  %s28_s22 = sadd.s32 1, %s1206_s17 }
   0x7   : > { %p26_p0 = scmp.eq.s32.totalorder %s25_s21, 0  ;;  %p35_p1 = scmp.ne.s32.totalorder %s1206_s17, %s1202_s16 }
   0x8   : > { %p36_p2 = scmp.eq.s32.totalorder %s1210_s18, 0  ;;  %p41_p3 = scmp.ne.s32.totalorder %s1202_s16, %s1198_s15 }
   0x9   : > { %s1286_s23 = scalar_select %p26_p0, %s1206_s17, %s28_s22  }
   0xa   : > { %p37_p4 = por %p36_p2, %p35_p1  ;;  %p42_p5 = scmp.eq.s32.totalorder %s1273_s19, 0 }
   0xb   : > { %p1000_p6 = scmp.lt.s32.totalorder %s1210_s18, 2  ;;  %s1295_s25 = sand.u32 1, %s1206_s17  }
   0xc   : > { %p1290_p7 = por %p42_p5, %p41_p3  ;;  %s190_s27 = sand.u32 1, %s1210_s18  }
   0xd   : > { %p1297_p8 = pnand %p1000_p6, %p37_p4  ;;  %s980_s28 = smul.u32 24, %s1295_s25 }
   0xe   : > { %s1516_s24 = scalar_select %p1290_p7, 1, 0 }
   0xf   : > { %s956_s29 = smul.u32 384, %s1210_s18  ;;  %s194_s7 = scalar_lea.vmem [#allocation4], %s980_s28 }
  0x10   : > { %s201_s8 = sshll.u32 %s194_s7, 4  ;;  %s1315_s9 = scalar_lea.sflag [#allocation5], %s190_s27  ;;  %s1313_s8 = int_to_ptr.vmem [resolvable:$true] %s201_s8 }
  0x11   : > { %s1309_s6 = scalar_lea.hbm %s1510_s1, %s956_s29  ;;  %p1321_p10 = pneg %p1297_p8 }
  0x12   : > { %s1082_s10 = scalar_lea.hbm %s1309_s6, 384  ;;  %s1087_s14 = scalar_lea.hbm %s1510_s1, 768 }
  0x13   : > { %p1083_p9 = scmp.ne.s32.totalorder %s1309_s6, %s1082_s10  ;;  %p1088_p13 = scmp.lt.u32.totalorder %s1309_s6, %s1510_s1 }
  0x14   : > { %p1089_p0 = scmp.lt.u32.totalorder %s1087_s14, %s1082_s10  ;;  %p1091_p2 = scmp.lt.u32.totalorder %s1082_s10, %s1309_s6 }
  0x15   : > { %p1085_p11 = pnand %p1321_p10, %p1083_p9 }
  0x16   : > { %p1090_p1 = por %p1089_p0, %p1088_p13 }
  0x17   : > { %p1086_p12 = pneg %p1085_p11 }
  0x18   : > { %p1092_p3 = por %p1091_p2, %p1090_p1 }
  0x1a   : > { %p1093_p4 = pnand %p1092_p3, %p1086_p12 }
  0x1c   : > { %1096 = shalt.err (!%p1093_p4)
}
  0x1d   : > { %s1097_s22 = scalar_lea.vmem %s1313_s8, 384  ;;  %s1212_s27 = smov [#allocation4]  }
  0x1e   : > { %p1098_p5 = scmp.ne.s32.totalorder %s1313_s8, %s1097_s22  ;;  %s1102_s30 = sshll.u32 %s1212_s27, 4  ;;  %s1103_s30 = int_to_ptr.vmem [resolvable:$false] %s1102_s30 }
  0x1f   : > { %s1104_s5 = scalar_lea.vmem %s1103_s30, 768  ;;  %p1105_p11 = scmp.lt.s32.totalorder %s1313_s8, %s1103_s30 }
  0x20   : > { %p1100_p6 = pnand %p1098_p5, %p1321_p10  ;;  %p1106_p7 = scmp.lt.s32.totalorder %s1104_s5, %s1097_s22 }
  0x22   : > { %p1101_p9 = pneg %p1100_p6  ;;  %p1107_p13 = por %p1106_p7, %p1105_p11 }
  0x24   : > { %p1108_p0 = pnand %p1107_p13, %p1101_p9 }
  0x26   : > { %1111 = shalt.err (!%p1108_p0)
}
  0x27   : > { %s1515_s7 = smov 128   ;;  %s1214_s10 = smov 8  }
  0x28   : > { %996 = dma.hbm_to_vmem [thread:$0]  (!%p1297_p8), %s1309_s6, 384, %s1313_s8, %s1315_s9, %s1515_s7, %s1515_s7, %s1214_s10  }
  0x29   : > { %p950_p7 = scmp.ge.s32.totalorder %s1210_s18, 1  ;;  %p230_p12 = scmp.lt.s32.totalorder %s1210_s18, 3 }
  0x2a   : > { %s979_s12 = smul.u32 12, %s1295_s25  ;;  %s170_s6 = scalar_lea.sflag [#allocation3], %s1295_s25 }
  0x2b   : > { %p1351_p1 = pnand %p950_p7, %p230_p12  ;;  %s955_s14 = smul.u32 192, %s1210_s18 }
  0x2c   : > { %s173_s27 = scalar_lea.vmem [#allocation2], %s979_s12  ;;  %s1117_s15 = scalar_lea.hbm %s1509_s0, 384 }
  0x2d   : > { %s1519_s13 = scalar_select %p1351_p1, 1, 0 }
  0x2e   : > { %s1359_s22 = scalar_lea.hbm %s1509_s0, %s955_s14  ;;  %s180_s30 = sshll.u32 %s173_s27, 4  ;;  %s1361_s30 = int_to_ptr.vmem [resolvable:$true] %s180_s30 }
  0x2f   : > { %s1112_s8 = scalar_lea.hbm %s1359_s22, 192  ;;  %p1118_p5 = scmp.lt.u32.totalorder %s1359_s22, %s1509_s0 }
  0x30   : > { %p1113_p2 = scmp.ne.s32.totalorder %s1359_s22, %s1112_s8  ;;  %p1119_p6 = scmp.lt.u32.totalorder %s1117_s15, %s1112_s8 }
  0x31   : > { %p1121_p11 = scmp.lt.u32.totalorder %s1112_s8, %s1359_s22 }
  0x32   : > { %p1115_p3 = pnand %p1113_p2, %p1321_p10  ;;  %p1120_p9 = por %p1119_p6, %p1118_p5 }
  0x34   : > { %p1116_p4 = pneg %p1115_p3  ;;  %p1122_p13 = por %p1121_p11, %p1120_p9 }
  0x36   : > { %p1123_p0 = pnand %p1122_p13, %p1116_p4 }
  0x38   : > { %1126 = shalt.err (!%p1123_p0)
}
  0x39   : > { %s1127_s12 = scalar_lea.vmem %s1361_s30, 192  ;;  %s1215_s7 = smov [#allocation2]  }
  0x3a   : > { %p1128_p7 = scmp.ne.s32.totalorder %s1361_s30, %s1127_s12  ;;  %s1132_s27 = sshll.u32 %s1215_s7, 4  ;;  %s1133_s27 = int_to_ptr.vmem [resolvable:$false] %s1132_s27 }
  0x3b   : > { %s1134_s5 = scalar_lea.vmem %s1133_s27, 384  ;;  %p1135_p3 = scmp.lt.s32.totalorder %s1361_s30, %s1133_s27 }
  0x3c   : > { %p1130_p12 = pnand %p1128_p7, %p1321_p10  ;;  %p1136_p1 = scmp.lt.s32.totalorder %s1134_s5, %s1127_s12 }
  0x3e   : > { %p1131_p2 = pneg %p1130_p12  ;;  %p1137_p5 = por %p1136_p1, %p1135_p3 }
  0x40   : > { %p1138_p6 = pnand %p1137_p5, %p1131_p2 }
  0x42   : > { %1141 = shalt.err (!%p1138_p6)
}
  0x43   : > { %s1216_s8 = smov 64   ;;  %s1217_s15 = smov 4  }
  0x44   : > { %993 = dma.hbm_to_vmem [thread:$0]  (!%p1297_p8), %s1359_s22, 192, %s1361_s30, %s170_s6, %s1216_s8, %s1216_s8, %s1217_s15  }
  0x45   : > { %s1392_s12 = scalar_lea.hbm %s1511_s2, %s956_s29  ;;  %s215_s7 = scalar_lea.vmem [#allocation6], %s980_s28 }
  0x46   : > { %s222_s27 = sshll.u32 %s215_s7, 4  ;;  %s1142_s5 = scalar_lea.hbm %s1392_s12, 384  ;;  %s1396_s27 = int_to_ptr.vmem [resolvable:$true] %s222_s27 }
  0x47   : > { %p1143_p1 = scmp.ne.s32.totalorder %s1392_s12, %s1142_s5  ;;  %s1147_s30 = scalar_lea.hbm %s1511_s2, 768 }
  0x48   : > { %p1148_p11 = scmp.lt.u32.totalorder %s1392_s12, %s1511_s2  ;;  %p1149_p13 = scmp.lt.u32.totalorder %s1147_s30, %s1142_s5 }
  0x49   : > { %p1145_p4 = pnand %p1143_p1, %p1321_p10  ;;  %p1151_p7 = scmp.lt.u32.totalorder %s1142_s5, %s1392_s12 }
  0x4a   : > { %p1150_p0 = por %p1149_p13, %p1148_p11 }
  0x4b   : > { %p1146_p9 = pneg %p1145_p4 }
  0x4c   : > { %p1152_p12 = por %p1151_p7, %p1150_p0 }
  0x4e   : > { %p1153_p2 = pnand %p1152_p12, %p1146_p9 }
  0x50   : > { %1156 = shalt.err (!%p1153_p2)
}
  0x51   : > { %s1157_s25 = scalar_lea.vmem %s1396_s27, 384  ;;  %s1218_s28 = smov [#allocation6]  }
  0x52   : > { %p1158_p3 = scmp.ne.s32.totalorder %s1396_s27, %s1157_s25  ;;  %s1162_s8 = sshll.u32 %s1218_s28, 4  ;;  %s1163_s8 = int_to_ptr.vmem [resolvable:$false] %s1162_s8 }
  0x53   : > { %s1164_s15 = scalar_lea.vmem %s1163_s8, 768  ;;  %p1165_p1 = scmp.lt.s32.totalorder %s1396_s27, %s1163_s8 }
  0x54   : > { %p1160_p5 = pnand %p1158_p3, %p1321_p10  ;;  %p1166_p4 = scmp.lt.s32.totalorder %s1164_s15, %s1157_s25 }
  0x56   : > { %p1161_p6 = pneg %p1160_p5  ;;  %p1167_p11 = por %p1166_p4, %p1165_p1 }
  0x58   : > { %p1168_p13 = pnand %p1167_p11, %p1161_p6 }
  0x5a   : > { %1171 = shalt.err (!%p1168_p13)
}
  0x5b   : > { %s1520_s14 = smov 128   ;;  %p1521_p10 = scmp.ne.s32.totalorder %s1519_s13, 0 }
  0x5c   : > { %999 = dma.hbm_to_vmem [thread:$0]  (!%p1297_p8), %s1392_s12, 384, %s1396_s27, %s1315_s9, %s1520_s14, %s1520_s14, %s1214_s10  }
  0x5d   : > { %234 = sbr.rel (%p1521_p10) target bundleno = 899 (0x383), region = 32  ;;  %s1426_s11 = sand.u32 (!%p1521_p10), 1, %s1202_s16  }
  0x5e   : > { %s982_s21 = smul.u32 (!%p1521_p10), 12, %s1426_s11  ;;  %s237_s7 = scalar_lea.sflag (!%p1521_p10), [#allocation3], %s1426_s11 }
  0x5f   : > { %p1522_p9 = scmp.ne.s32.totalorder (!%p1521_p10), %s1516_s24, 0 }
  0x60   : > { %s240_s5 = scalar_lea.vmem (!%p1521_p10), [#allocation2], %s982_s21 }
  0x64   : > { %1189 = dma.done.wait (%p1522_p9), %s237_s7, 192  }
  0x65   : > { %1191 = vsyncadd (%p1522_p9), %s237_s7, 4294967104  ;;  %s245_s26 = sand.u32 1, %s1273_s19   ;;  %s983_s9 = smul.u32 24, %s1426_s11 }
  0x66   : > { %s246_s10 = scalar_lea.sflag [#allocation5], %s245_s26 }
  0x67   : > { %s249_s13 = scalar_lea.vmem [#allocation4], %s983_s9 }
  0x68   : > { %1193 = dma.done.wait (%p1522_p9), %s246_s10, 768  }
  0x69   : > { %1195 = vsyncadd (%p1522_p9), %s246_s10, 4294966528  ;;  %v1219_v0 = vmov 0.0   ;;  %vm1220_vm0 = vmmov 0   ;;  %v310_v1 = vld [vmem:[%s249_s13] sm:$0xff]  ;;  %v311_v2 = vld [vmem:[%s249_s13 + $0x8] sm:$0xff]  ;;  %vm529_vm1 = vcmask 60416  }
  0x6a   : > { %964 = vmatprep.subr.mxu0 %v1219_v0  ;;  %969 = vmatprep.subr.mxu1 %v1219_v0  ;;  %v307_v3 = vld [vmem:[%s240_s5] sm:$0xf]  ;;  %v308_v4 = vld [vmem:[%s240_s5 + $0x4] sm:$0xf]  ;;  %v312_v5 = vld [vmem:[%s249_s13 + $0x10] sm:$0xff]  ;;  %vm575_vm6 = vcmask 1041409  }
  0x6b   : > { %966 = vmatprep.mubr.msk.f32.mxu0 %vm1220_vm0, %v1219_v0  ;;  %971 = vmatprep.mubr.msk.f32.mxu1 %vm1220_vm0, %v1219_v0  ;;  %v309_v6 = vld [vmem:[%s240_s5 + $0x8] sm:$0xf]  ;;  %vm577_vm8 = vcmask 1042434   ;;  %vm580_vm10 = vcmask 59392   ;;  %p299_p8 = scmp.lt.s32.totalorder %s1273_s19, 1  ;;  %s1463_s22 = scalar_lea.vmem [#allocation6], %s983_s9 }
  0x6c   : > { %965 = vmatpush3.xpose.msra.mxu0 %v310_v1  ;;  %970 = vmatpush3.xpose.msra.mxu1 %v311_v2 }
  0x6d   : > { %974 = vmatprep.subr.mxu0 %v1219_v0  ;;  %s1528_s19 = smov (!%p299_p8, %s1273_s19), 1 }
  0x6e   : > { %s951_s24 = sshll.u32 %s1528_s19, 2 }
  0x6f   : > { %967 = vmatmul.mubr.f32.vlgmr.msra.gmra.mrb[0].mxu0 %v307_v3  ;;  %972 = vmatmul.mubr.f32.vlgmr.msra.gmra.mrb[0].mxu1 %v308_v4  ;;  %s306_s18 = scalar_lea.vmem %s1513_s4, %s951_s24  ;;  %s302_s6 = scalar_lea.vmem %s1512_s3, %s951_s24 }
  0x70   : > { %975 = vmatpush3.xpose.msra.mxu0 %v312_v5  ;;  %976 = vmatprep.mubr.msk.f32.mxu0 %vm1220_vm0, %v1219_v0 }
  0x73   : > { %977 = vmatmul.mubr.f32.vlgmr.msra.gmra.mrb[2].mxu0 %v309_v6 }
 0x142   : > { %v379_v7 = vpop.f32.mrb[0].mxu0  ;;  %v449_v8 = vpop.f32.mrb[0].mxu1 }
 0x143   : > { %v523_v9 = vmul.f32 0.088388346, %v379_v7  ;;  %v524_v10 = vmul.f32 0.088388346, %v449_v8  ;;  %v968_v11 = vpop.f32.mrb[1].mxu0  ;;  %v973_v12 = vpop.f32.mrb[1].mxu1 }
 0x144   : > { %v1221_v11 = vmov 4   ;;  %v1222_v12 = vmov 0  }
 0x145   : > { %v526_v13 = vmul.f32 %v523_v9, %v523_v9  ;;  %v527_v14 = vmul.f32 %v524_v10, %v524_v10  ;;  %1051 = vset.pattern.permute.xlu0 %v1221_v11  ;;  %1047 = vset.pattern.permute.xlu1 %v1222_v12 }
 0x146   : > { %v519_v15 = vpop.f32.mrb[2].mxu0 }
 0x147   : > { %v530_v16 = vsel %vm529_vm1, %v526_v13, 0.0  ;;  %v537_v17 = vsel %vm529_vm1, %v527_v14, 0.0  ;;  %v525_v18 = vmul.f32 0.088388346, %v519_v15  ;;  %v978_v19 = vpop.f32.mrb[3].mxu0 }
 0x148   : > { %v531_v20 = vrot.slane %v530_v16, 4  ;;  %v538_v21 = vrot.slane %v537_v17, 4 }
 0x149   : > { %v528_v22 = vmul.f32 %v525_v18, %v525_v18 }
 0x14a   : > { %v532_v23 = vadd.f32 %v531_v20, %v530_v16  ;;  %v539_v24 = vadd.f32 %v538_v21, %v537_v17 }
 0x14b   : > { %v544_v25 = vsel %vm529_vm1, %v528_v22, 0.0 }
 0x14c   : > { %v533_v26 = vrot.slane %v532_v23, 2  ;;  %v540_v27 = vrot.slane %v539_v24, 2  ;;  %v545_v28 = vrot.slane %v544_v25, 4 }
 0x14e   : > { %v534_v29 = vadd.f32 %v533_v26, %v532_v23  ;;  %v541_v30 = vadd.f32 %v540_v27, %v539_v24  ;;  %v546_v31 = vadd.f32 %v545_v28, %v544_v25  ;;  %v1223_v24 = vmov 5  }
 0x14f   : > { %v1224_v25 = vmov 1   ;;  %v1225_v28 = vmov 2  }
 0x150   : > { %v535_v32 = vrot.slane %v534_v29, 1  ;;  %v542_v33 = vrot.slane %v541_v30, 1  ;;  %v547_v34 = vrot.slane %v546_v31, 2 }
 0x152   : > { %v536_v35 = vadd.f32 %v535_v32, %v534_v29  ;;  %v543_v36 = vadd.f32 %v542_v33, %v541_v30  ;;  %v548_v37 = vadd.f32 %v547_v34, %v546_v31  ;;  %v1226_v29 = vmov 3  }
 0x153   : > { %v1227_v30 = vmov 6   ;;  %v1228_v31 = vmov 7  }
 0x154   : > { %v549_v38 = vrot.slane %v548_v37, 1  ;;  %1064 = vrsqrt.f32 %v536_v35  ;;  %vm553_vm2 = vcmp.eq.f32.partialorder %v536_v35, inf  ;;  %v556_v45 = vand.u32 2147483648, %v536_v35 }
 0x155   : > { %1066 = vrsqrt.f32 %v543_v36  ;;  %vm560_vm3 = vcmp.eq.f32.partialorder %v543_v36, inf  ;;  %v563_v46 = vand.u32 2147483648, %v543_v36  ;;  %vm555_vm4 = vcmp.eq.f32.partialorder %v536_v35, 0.0 }
 0x156   : > { %v550_v39 = vadd.f32 %v549_v38, %v548_v37  ;;  %vm562_vm5 = vcmp.eq.f32.partialorder %v543_v36, 0.0 }
 0x158   : > { %1068 = vrsqrt.f32 %v550_v39  ;;  %vm567_vm7 = vcmp.eq.f32.partialorder %v550_v39, inf  ;;  %v570_v52 = vand.u32 2147483648, %v550_v39  ;;  %vm569_vm9 = vcmp.eq.f32.partialorder %v550_v39, 0.0 }
 0x15e   : > { %v1065_v40 = vpop.eup %1064 }
 0x15f   : > { %v1067_v41 = vpop.eup %1066  ;;  %v552_v42 = vmul.f32 %v1065_v40, %v536_v35 }
 0x160   : > { %v559_v43 = vmul.f32 %v1067_v41, %v543_v36 }
 0x161   : > { %v554_v44 = vsel %vm553_vm2, %v536_v35, %v552_v42 }
 0x162   : > { %v1069_v47 = vpop.eup %1068  ;;  %v561_v48 = vsel %vm560_vm3, %v543_v36, %v559_v43  ;;  %v557_v49 = vsel %vm555_vm4, %v556_v45, %v554_v44 }
 0x163   : > { %v564_v50 = vsel %vm562_vm5, %v563_v46, %v561_v48  ;;  %v566_v51 = vmul.f32 %v1069_v47, %v550_v39  ;;  %v649_v46 = vld [vmem:[%s1463_s22 + $0x1] sm:$0x1]  ;;  %v631_v48 = vld [vmem:[%s1463_s22] sm:$0x1] }
 0x164   : > { %v576_v55 = vsel %vm575_vm6, %v564_v50, %v557_v49 }
 0x165   : > { %v568_v53 = vsel %vm567_vm7, %v550_v39, %v566_v51 }
 0x166   : > { %v571_v54 = vsel %vm569_vm9, %v570_v52, %v568_v53  ;;  %v650_v52 = vld [vmem:[%s1463_s22 + $0x9] sm:$0x1]  ;;  %v691_v53 = vld [vmem:[%s1463_s22 + $0x3] sm:$0x1] }
 0x167   : > { %v578_v56 = vsel %vm577_vm8, %v571_v54, %v576_v55 }
 0x168   : > { %v581_v57 = vsel %vm580_vm10, %v578_v56, -inf  ;;  %v632_v56 = vld [vmem:[%s1463_s22 + $0x8] sm:$0x1] }
 0x169   : > { %582 = vmax.xlane.f32.xlu0 %v581_v57  ;;  %v671_v57 = vld [vmem:[%s1463_s22 + $0xa] sm:$0x1] }
 0x1f6   : > { %v583_v58 = vpop.xlane.xlu0 %582 }
 0x1f7   : > { %v585_v59 = vrot.slane %v583_v58, 1  ;;  %v586_v60 = vrot.slane %v583_v58, 2  ;;  %v590_v61 = vsub.f32 %v557_v49, %v583_v58  ;;  %v670_v49 = vld [vmem:[%s1463_s22 + $0x2] sm:$0x1] }
 0x1f9   : > { %v591_v62 = vsub.f32 %v564_v50, %v585_v59  ;;  %v592_v63 = vsub.f32 %v571_v54, %v586_v60  ;;  %v593_v0 = vmul.f32 1.442695, %v590_v61 }
 0x1fb   : > { %v595_v1 = vmul.f32 1.442695, %v591_v62  ;;  %v597_v2 = vmul.f32 1.442695, %v592_v63  ;;  %v651_v62 = vld [vmem:[%s1463_s22 + $0x11] sm:$0x1] }
 0x1fc   : > { %v692_v63 = vld [vmem:[%s1463_s22 + $0xb] sm:$0x1] }
 0x1fd   : > { %1070 = vpow2.f32 %v595_v1 }
 0x1fe   : > { %1072 = vpow2.f32 %v597_v2 }
 0x1ff   : > { %1074 = vpow2.f32 %v593_v0 }
 0x207   : > { %v1071_v3 = vpop.eup %1070 }
 0x208   : > { %v1073_v4 = vpop.eup %1072  ;;  %v602_v5 = vrot.slane %v1071_v3, 7 }
 0x209   : > { %v1075_v6 = vpop.eup %1074  ;;  %v604_v7 = vrot.slane %v1073_v4, 6 }
 0x20a   : > { %v603_v8 = vsel %vm575_vm6, %v602_v5, %v1075_v6  ;;  %v672_v5 = vld [vmem:[%s1463_s22 + $0x12] sm:$0x1] }
 0x20b   : > { %v605_v9 = vsel %vm577_vm8, %v604_v7, %v603_v8  ;;  %v712_v7 = vld [vmem:[%s1463_s22 + $0x4] sm:$0x1] }
 0x20c   : > { %v607_v10 = vsel %vm580_vm10, %v605_v9, 0.0 }
 0x20d   : > { %608 = vadd.xlane.f32.xlu0 %v607_v10 }
 0x29a   : > { %v609_v13 = vpop.xlane.xlu0 %608 }
 0x29b   : > { %v611_v14 = vrot.slane %v609_v13, 1  ;;  %v612_v15 = vrot.slane %v609_v13, 2  ;;  %1076 = vrcp.f32 %v609_v13  ;;  %v693_v13 = vld [vmem:[%s1463_s22 + $0x13] sm:$0x1] }
 0x29d   : > { %1078 = vrcp.f32 %v611_v14  ;;  %v734_v14 = vld [vmem:[%s1463_s22 + $0xd] sm:$0x1] }
 0x29e   : > { %1080 = vrcp.f32 %v612_v15 }
 0x2a5   : > { %v1077_v16 = vpop.eup %1076 }
 0x2a6   : > { %v617_v17 = vmul.f32 %v1077_v16, %v1075_v6  ;;  %v713_v6 = vld [vmem:[%s1463_s22 + $0xc] sm:$0x1] }
 0x2a7   : > { %v1079_v18 = vpop.eup %1078 }
 0x2a8   : > { %v1081_v19 = vpop.eup %1080  ;;  %v619_v20 = vmul.f32 %v1079_v18, %v1071_v3  ;;  %716 = vperm.xlu0 %1051, %v617_v17   ;;  %635 = vperm.xlu1 %1047, %v617_v17   ;;  %v633_v3 = vld [vmem:[%s1463_s22 + $0x10] sm:$0x1] }
 0x2a9   : > { %v621_v21 = vmul.f32 %v1081_v19, %v1073_v4 }
 0x2aa   : > { %v625_v22 = vrot.slane %v619_v20, 7 }
 0x2ab   : > { %v627_v23 = vrot.slane %v621_v21, 6 }
 0x2ac   : > { %1052 = vset.pattern.permute.xlu0 %v1223_v24  ;;  %1048 = vset.pattern.permute.xlu1 %v1224_v25  ;;  %v626_v26 = vsel %vm575_vm6, %v625_v22, %v617_v17  ;;  %v733_v22 = vld [vmem:[%s1463_s22 + $0x5] sm:$0x1] }
 0x2ad   : > { %737 = vperm.xlu0 %1052, %v617_v17   ;;  %653 = vperm.xlu1 %1048, %v617_v17   ;;  %v628_v27 = vsel %vm577_vm8, %v627_v23, %v626_v26 }
 0x2ae   : > { %630 = vst.msk [vmem:[%s306_s18] sm:$0x7] %vm580_vm10, %v628_v27 }
 0x2b1   : > { %1054 = vset.pattern.permute.xlu0 %v1222_v12  ;;  %1049 = vset.pattern.permute.xlu1 %v1225_v28 }
 0x2b2   : > { %674 = vperm.xlu1 %1049, %v617_v17   ;;  %643 = vperm.xlu0 %1054, %v621_v21  }
 0x2b6   : > { %1050 = vset.pattern.permute.xlu1 %v1226_v29  ;;  %1055 = vset.pattern.permute.xlu0 %v1227_v30 }
 0x2b7   : > { %695 = vperm.xlu1 %1050, %v617_v17   ;;  %758 = vperm.xlu0 %1055, %v617_v17  }
 0x2bb   : > { %1053 = vset.pattern.permute.xlu1 %v1222_v12  ;;  %1063 = vset.pattern.permute.xlu0 %v1228_v31 }
 0x2bc   : > { %779 = vperm.xlu0 %1063, %v617_v17   ;;  %639 = vperm.xlu1 %1053, %v619_v20  }
 0x2c0   : > { %1056 = vset.pattern.permute.xlu1 %v1224_v25 }
 0x2c1   : > { %657 = vperm.xlu1 %1056, %v619_v20  }
 0x2c5   : > { %661 = vperm.xlu1 %1056, %v621_v21  }
 0x2c9   : > { %1057 = vset.pattern.permute.xlu1 %v1225_v28 }
 0x2ca   : > { %678 = vperm.xlu1 %1057, %v619_v20  }
 0x2ce   : > { %682 = vperm.xlu1 %1057, %v621_v21  }
 0x2d2   : > { %1058 = vset.pattern.permute.xlu1 %v1226_v29  ;;  %v735_v29 = vld [vmem:[%s1463_s22 + $0x15] sm:$0x1] }
 0x2d3   : > { %699 = vperm.xlu1 %1058, %v619_v20  }
 0x2d7   : > { %703 = vperm.xlu1 %1058, %v621_v21  }
 0x2db   : > { %1059 = vset.pattern.permute.xlu1 %v1221_v11 }
 0x2dc   : > { %720 = vperm.xlu1 %1059, %v619_v20  }
 0x2e0   : > { %724 = vperm.xlu1 %1059, %v621_v21  }
 0x2e4   : > { %1060 = vset.pattern.permute.xlu1 %v1223_v24 }
 0x2e5   : > { %741 = vperm.xlu1 %1060, %v619_v20  }
 0x2e9   : > { %745 = vperm.xlu1 %1060, %v621_v21  }
 0x2ed   : > { %1061 = vset.pattern.permute.xlu1 %v1227_v30 }
 0x2ee   : > { %762 = vperm.xlu1 %1061, %v619_v20  }
 0x2f2   : > { %766 = vperm.xlu1 %1061, %v621_v21  }
 0x2f6   : > { %1062 = vset.pattern.permute.xlu1 %v1228_v31 }
 0x2f7   : > { %783 = vperm.xlu1 %1062, %v619_v20   ;;  %v714_v20 = vld [vmem:[%s1463_s22 + $0x14] sm:$0x1] }
 0x2fb   : > { %787 = vperm.xlu1 %1062, %v621_v21   ;;  %v755_v21 = vld [vmem:[%s1463_s22 + $0xe] sm:$0x1] }
 0x327   : > { %v636_v32 = vpop.permute.xlu1 %635  ;;  %v717_v45 = vpop.permute.xlu0 %716 }
 0x328   : > { %v646_v54 = vmul.f32 %v636_v32, %v631_v48  ;;  %v727_v19 = vmul.f32 %v717_v45, %v712_v7 }
 0x32c   : > { %v654_v33 = vpop.permute.xlu1 %653  ;;  %v738_v50 = vpop.permute.xlu0 %737 }
 0x32d   : > { %v664_v51 = vmul.f32 %v654_v33, %v649_v46 }
 0x32f   : > { %v667_v60 = vadd.f32 %v664_v51, %v646_v54  ;;  %v777_v51 = vld [vmem:[%s1463_s22 + $0x17] sm:$0x1] }
 0x331   : > { %v675_v34 = vpop.permute.xlu1 %674  ;;  %v644_v4 = vpop.permute.xlu0 %643 }
 0x332   : > { %v685_v55 = vmul.f32 %v675_v34, %v670_v49  ;;  %v648_v15 = vmul.f32 %v644_v4, %v633_v3 }
 0x334   : > { %v688_v2 = vadd.f32 %v685_v55, %v667_v60 }
 0x336   : > { %v696_v35 = vpop.permute.xlu1 %695  ;;  %v759_v30 = vpop.permute.xlu0 %758 }
 0x337   : > { %v706_v61 = vmul.f32 %v696_v35, %v691_v53  ;;  %v748_v35 = vmul.f32 %v738_v50, %v733_v22 }
 0x339   : > { %v709_v12 = vadd.f32 %v706_v61, %v688_v2 }
 0x33b   : > { %v640_v36 = vpop.permute.xlu1 %639  ;;  %v730_v28 = vadd.f32 %v727_v19, %v709_v12 }
 0x33c   : > { %v647_v0 = vmul.f32 %v640_v36, %v632_v56  ;;  %v756_v36 = vld [vmem:[%s1463_s22 + $0x16] sm:$0x1] }
 0x340   : > { %v658_v37 = vpop.permute.xlu1 %657 }
 0x341   : > { %v665_v59 = vmul.f32 %v658_v37, %v650_v52  ;;  %v776_v37 = vld [vmem:[%s1463_s22 + $0xf] sm:$0x1]  ;;  %v780_v52 = vpop.permute.xlu0 %779 }
 0x343   : > { %v668_v8 = vadd.f32 %v665_v59, %v647_v0 }
 0x344   : > { %v662_v38 = vpop.permute.xlu1 %661 }
 0x345   : > { %v666_v9 = vmul.f32 %v662_v38, %v651_v62  ;;  %v754_v38 = vld [vmem:[%s1463_s22 + $0x6] sm:$0x1] }
 0x346   : > { %v769_v49 = vmul.f32 %v759_v30, %v754_v38 }
 0x347   : > { %v669_v23 = vadd.f32 %v666_v9, %v648_v15 }
 0x349   : > { %v679_v39 = vpop.permute.xlu1 %678 }
 0x34a   : > { %v686_v1 = vmul.f32 %v679_v39, %v671_v57 }
 0x34c   : > { %v689_v16 = vadd.f32 %v686_v1, %v668_v8 }
 0x34d   : > { %v683_v40 = vpop.permute.xlu1 %682 }
 0x34e   : > { %v687_v17 = vmul.f32 %v683_v40, %v672_v5 }
 0x350   : > { %v690_v31 = vadd.f32 %v687_v17, %v669_v23 }
 0x352   : > { %v700_v41 = vpop.permute.xlu1 %699 }
 0x353   : > { %v707_v10 = vmul.f32 %v700_v41, %v692_v63 }
 0x355   : > { %v710_v24 = vadd.f32 %v707_v10, %v689_v16 }
 0x356   : > { %v704_v42 = vpop.permute.xlu1 %703 }
 0x357   : > { %v708_v25 = vmul.f32 %v704_v42, %v693_v13 }
 0x359   : > { %v711_v39 = vadd.f32 %v708_v25, %v690_v31 }
 0x35b   : > { %v721_v43 = vpop.permute.xlu1 %720 }
 0x35c   : > { %v728_v18 = vmul.f32 %v721_v43, %v713_v6  ;;  %v751_v43 = vadd.f32 %v748_v35, %v730_v28 }
 0x35e   : > { %v731_v32 = vadd.f32 %v728_v18, %v710_v24  ;;  %v772_v50 = vadd.f32 %v769_v49, %v751_v43 }
 0x35f   : > { %v725_v44 = vpop.permute.xlu1 %724 }
 0x360   : > { %v729_v33 = vmul.f32 %v725_v44, %v714_v20  ;;  %v775_v44 = vld [vmem:[%s1463_s22 + $0x7] sm:$0x1] }
 0x361   : > { %v790_v59 = vmul.f32 %v780_v52, %v775_v44 }
 0x362   : > { %v732_v45 = vadd.f32 %v729_v33, %v711_v39 }
 0x363   : > { %v793_v61 = vadd.f32 %v790_v59, %v772_v50 }
 0x364   : > { %v742_v47 = vpop.permute.xlu1 %741 }
 0x365   : > { %v749_v26 = vmul.f32 %v742_v47, %v734_v14 }
 0x367   : > { %v752_v40 = vadd.f32 %v749_v26, %v731_v32 }
 0x368   : > { %v746_v58 = vpop.permute.xlu1 %745 }
 0x369   : > { %v750_v41 = vmul.f32 %v746_v58, %v735_v29 }
 0x36b   : > { %v753_v53 = vadd.f32 %v750_v41, %v732_v45 }
 0x36d   : > { %v763_v11 = vpop.permute.xlu1 %762 }
 0x36e   : > { %v770_v34 = vmul.f32 %v763_v11, %v755_v21 }
 0x370   : > { %v773_v46 = vadd.f32 %v770_v34, %v752_v40 }
 0x371   : > { %v767_v27 = vpop.permute.xlu1 %766 }
 0x372   : > { %v771_v47 = vmul.f32 %v767_v27, %v756_v36 }
 0x374   : > { %v774_v56 = vadd.f32 %v771_v47, %v753_v53 }
 0x376   : > { %v784_v42 = vpop.permute.xlu1 %783 }
 0x377   : > { %v791_v48 = vmul.f32 %v784_v42, %v776_v37 }
 0x379   : > { %v794_v54 = vadd.f32 %v791_v48, %v773_v46 }
 0x37a   : > { %v788_v55 = vpop.permute.xlu1 %787 }
 0x37b   : > { %v792_v57 = vmul.f32 %v788_v55, %v777_v51  ;;  %v799_v60 = vrot.slane %v794_v54, 7 }
 0x37d   : > { %v795_v58 = vadd.f32 %v792_v57, %v774_v56  ;;  %v800_v63 = vsel %vm575_vm6, %v799_v60, %v793_v61 }
 0x37f   : > { %v801_v62 = vrot.slane %v795_v58, 6 }
 0x381   : > { %v802_v0 = vsel %vm577_vm8, %v801_v62, %v800_v63 }
 0x382   : > { %804 = vst [vmem:[%s302_s6] sm:$0x7] %v802_v0 }
 0x383 PF: > { %p18_p0 = scmp.ge.s32.totalorder %s1276_s20, 4   ;;  %s1523_s15 = smov %s1202_s16 }
 0x384   : > { %s1524_s16 = smov %s1206_s17  ;;  %s1525_s17 = smov %s1286_s23 }
 0x385   : > { %s1526_s18 = smov %s1276_s20  ;;  %20 = sbr.rel (!%p18_p0) target bundleno = 5 (0x5), region = 108 }
 0x38c   :  { %838 = vsyncpa [#allocation3], 1 }
 0x38d   :  { %840 = vsyncpa [#allocation3 + $0x1], 1 }
 0x38e   :  { %841 = vsyncpa [#allocation5], 1 }
 0x38f   :  { %843 = vsyncpa [#allocation5 + $0x1], 1 }

</bundles_post_ra>
